<compile_context>
chip_gen: v7x
topology: tpu7x:2x2x1
jax: 0.10.0
libtpu: 0.0.40
codegen_flags: <defaults>
</compile_context>

<pallas_src>
import jax
import jax.numpy as jnp
from jax import lax
from jax.experimental import pallas as pl
from jax.experimental.pallas import tpu as pltpu


_VMEM_LIMIT = 32 * 1024 * 1024  # safe on v5e/v6e/v7x; tiles are far smaller


# ----------------------------- Pallas kernels ------------------------------

def _conv_bn_relu_kernel(w_ref, b_ref, p_ref, o_ref):
    # w_ref: (Cout, K) scale-folded weight; p_ref: (K, TM) patch-slab tile
    # b_ref: (Cout, 1) f32 bias; o_ref: (Cout, TM) lane-dense output tile.
    acc = jnp.dot(w_ref[...], p_ref[...], preferred_element_type=jnp.float32)
    o_ref[...] = jnp.maximum(acc + b_ref[...], 0.0).astype(o_ref.dtype)


def _stem_head_kernel(w1_ref, b1_ref, w0_ref, b0_ref, p_ref, feat_ref, fl_ref):
    # First 3x3/s2 conv (3->16) fused with the left-branch 1x1 conv (16->8).
    acc1 = jnp.dot(w1_ref[...], p_ref[...], preferred_element_type=jnp.float32)
    feat = jnp.maximum(acc1 + b1_ref[...], 0.0)                    # (16, TM) f32
    feat_ref[...] = feat.astype(feat_ref.dtype)
    acc0 = jnp.dot(w0_ref[...], feat.astype(w0_ref.dtype),
                   preferred_element_type=jnp.float32)
    fl_ref[...] = jnp.maximum(acc0 + b0_ref[...], 0.0).astype(fl_ref.dtype)


def _maxpool_kernel(p_ref, o_ref):
    # p_ref: (KK, C, TM) window-stacked values; o_ref: (C, TM).
    o_ref[...] = jnp.max(p_ref[...].astype(jnp.float32), axis=0).astype(o_ref.dtype)


# ------------------------------ tiling helpers ------------------------------

def _round_up(x, m):
    return (x + m - 1) // m * m


def _choose_tile(m, max_tm=2048):
    """Pick a lane tile TM (multiple of 128) and padded lane extent Mp."""
    if m <= max_tm:
        tm = _round_up(m, 128)
        return tm, tm
    best_tm, best_mp = 128, _round_up(m, 128)
    for tm in (2048, 1024, 512, 256, 128):
        mp = _round_up(m, tm)
        if mp < best_mp or (mp == best_mp and tm > best_tm):
            best_tm, best_mp = tm, mp
    return best_tm, best_mp


def _pad_lanes(x, mp):
    pad = mp - x.shape[-1]
    if pad == 0:
        return x
    cfg = [(0, 0)] * (x.ndim - 1) + [(0, pad)]
    return jnp.pad(x, cfg)


# ------------------------------- JAX glue -----------------------------------

def extract_patches(x_nhwc, ksize, stride, padding, pad_value):
    """Return ((K*K, N, Ho, Wo, C) window-stacked taps, Ho, Wo)."""
    n, h, w, _ = x_nhwc.shape
    xp = jnp.pad(
        x_nhwc,
        ((0, 0), (padding, padding), (padding, padding), (0, 0)),
        constant_values=pad_value,
    )
    ho = (h + 2 * padding - ksize) // stride + 1
    wo = (w + 2 * padding - ksize) // stride + 1
    taps = []
    for kh in range(ksize):
        for kw in range(ksize):
            taps.append(xp[:, kh:kh + stride * ho:stride,
                           kw:kw + stride * wo:stride, :])
    return jnp.stack(taps, axis=0), ho, wo


def _im2col_t(x_nhwc, ksize, stride, padding, pad_value=0.0):
    """Lane-dense transposed im2col slab: (K*K*Cin, N*Ho*Wo), K=(kh,kw,cin)."""
    n, _, _, cin = x_nhwc.shape
    taps, ho, wo = extract_patches(x_nhwc, ksize, stride, padding, pad_value)
    kk = ksize * ksize
    p_t = jnp.transpose(taps, (0, 4, 1, 2, 3)).reshape(kk * cin, n * ho * wo)
    return p_t, ho, wo


def _fold_weight(w_oihw, scale, compute_dtype):
    """OIHW weight -> (Cout, KH*KW*Cin) with BN scale folded in."""
    cout, cin, kh, kw = w_oihw.shape
    w_t = jnp.transpose(w_oihw, (0, 2, 3, 1)).reshape(cout, kh * kw * cin)
    return (w_t * scale[:, None]).astype(compute_dtype)


def _conv_pallas(p_t, w_t, bias, tm, out_dtype):
    k, mp = p_t.shape
    cout = w_t.shape[0]
    grid = (mp // tm,)
    flops = int(2 * mp * k * cout)
    bytes_acc = int(p_t.size * p_t.dtype.itemsize
                    + w_t.size * w_t.dtype.itemsize
                    + bias.size * 4
                    + mp * cout * jnp.dtype(out_dtype).itemsize)
    return pl.pallas_call(
        _conv_bn_relu_kernel,
        out_shape=jax.ShapeDtypeStruct((cout, mp), out_dtype),
        grid_spec=pltpu.PrefetchScalarGridSpec(
            num_scalar_prefetch=0,
            grid=grid,
            in_specs=[
                pl.BlockSpec((cout, k), lambda i: (0, 0)),   # weight (resident)
                pl.BlockSpec((cout, 1), lambda i: (0, 0)),   # bias (resident)
                pl.BlockSpec((k, tm), lambda i: (0, i)),     # patch-slab tile
            ],
            out_specs=pl.BlockSpec((cout, tm), lambda i: (0, i)),
        ),
        compiler_params=pltpu.CompilerParams(
            dimension_semantics=("parallel",),
            vmem_limit_bytes=_VMEM_LIMIT,
        ),
        cost_estimate=pl.CostEstimate(
            flops=flops, transcendentals=0, bytes_accessed=bytes_acc),
    )(w_t, bias, p_t)


def conv_bn_relu(x_nhwc, p, stride, padding, compute_dtype, out_dtype=None):
    """ConvBNReLU (eval-mode BN folded into the weight) on NHWC input."""
    out_dtype = compute_dtype if out_dtype is None else out_dtype
    w_oihw = p["w"]
    cout, _, kh, _ = w_oihw.shape
    n = x_nhwc.shape[0]
    p_t, ho, wo = _im2col_t(x_nhwc, kh, stride, padding)
    m = n * ho * wo
    tm, mp = _choose_tile(m)
    p_t = _pad_lanes(p_t, mp).astype(compute_dtype)
    w_t = _fold_weight(w_oihw, p["scale"], compute_dtype)
    bias = p["bias"].reshape(cout, 1).astype(jnp.float32)
    out_t = _conv_pallas(p_t, w_t, bias, tm, out_dtype)[:, :m]
    return jnp.transpose(out_t.reshape(cout, n, ho, wo), (1, 2, 3, 0))


def stem_head(x_nhwc, p_conv, p_left0, compute_dtype):
    """Fused: conv(3->16, 3x3, s2) + left[0] 1x1 conv(16->8). Returns feat, fl0."""
    n = x_nhwc.shape[0]
    w1 = p_conv["w"]                        # (16, 3, 3, 3)
    c1, _, kh, _ = w1.shape
    w0 = p_left0["w"]                       # (8, 16, 1, 1)
    c0 = w0.shape[0]

    p_t, ho, wo = _im2col_t(x_nhwc, kh, 2, 1)
    k = p_t.shape[0]
    m = n * ho * wo
    tm, mp = _choose_tile(m)
    p_t = _pad_lanes(p_t, mp).astype(compute_dtype)

    w1_t = _fold_weight(w1, p_conv["scale"], compute_dtype)          # (16, K)
    b1 = p_conv["bias"].reshape(c1, 1).astype(jnp.float32)
    w0_t = (w0.reshape(c0, c1) * p_left0["scale"][:, None]).astype(compute_dtype)
    b0 = p_left0["bias"].reshape(c0, 1).astype(jnp.float32)

    grid = (mp // tm,)
    flops = int(2 * mp * k * c1 + 2 * mp * c1 * c0)
    bytes_acc = int(p_t.size * p_t.dtype.itemsize
                    + (w1_t.size + w0_t.size) * w1_t.dtype.itemsize
                    + mp * (c1 + c0) * jnp.dtype(compute_dtype).itemsize)

    feat_t, fl_t = pl.pallas_call(
        _stem_head_kernel,
        out_shape=(jax.ShapeDtypeStruct((c1, mp), compute_dtype),
                   jax.ShapeDtypeStruct((c0, mp), compute_dtype)),
        grid_spec=pltpu.PrefetchScalarGridSpec(
            num_scalar_prefetch=0,
            grid=grid,
            in_specs=[
                pl.BlockSpec((c1, k), lambda i: (0, 0)),
                pl.BlockSpec((c1, 1), lambda i: (0, 0)),
                pl.BlockSpec((c0, c1), lambda i: (0, 0)),
                pl.BlockSpec((c0, 1), lambda i: (0, 0)),
                pl.BlockSpec((k, tm), lambda i: (0, i)),
            ],
            out_specs=(pl.BlockSpec((c1, tm), lambda i: (0, i)),
                       pl.BlockSpec((c0, tm), lambda i: (0, i))),
        ),
        compiler_params=pltpu.CompilerParams(
            dimension_semantics=("parallel",),
            vmem_limit_bytes=_VMEM_LIMIT,
        ),
        cost_estimate=pl.CostEstimate(
            flops=flops, transcendentals=0, bytes_accessed=bytes_acc),
    )(w1_t, b1, w0_t, b0, p_t)

    feat = jnp.transpose(feat_t[:, :m].reshape(c1, n, ho, wo), (1, 2, 3, 0))
    fl0 = jnp.transpose(fl_t[:, :m].reshape(c0, n, ho, wo), (1, 2, 3, 0))
    return feat, fl0


def maxpool2d(x_nhwc, ksize=3, stride=2, padding=1):
    n, _, _, c = x_nhwc.shape
    neg = jnp.finfo(x_nhwc.dtype).min
    taps, ho, wo = extract_patches(x_nhwc, ksize, stride, padding, neg)
    kk = ksize * ksize
    m = n * ho * wo
    p_t = jnp.transpose(taps, (0, 4, 1, 2, 3)).reshape(kk, c, m)
    tm, mp = _choose_tile(m)
    p_t = _pad_lanes(p_t, mp)
    grid = (mp // tm,)
    bytes_acc = int(p_t.size * p_t.dtype.itemsize + mp * c * p_t.dtype.itemsize)
    out_t = pl.pallas_call(
        _maxpool_kernel,
        out_shape=jax.ShapeDtypeStruct((c, mp), x_nhwc.dtype),
        grid_spec=pltpu.PrefetchScalarGridSpec(
            num_scalar_prefetch=0,
            grid=grid,
            in_specs=[pl.BlockSpec((kk, c, tm), lambda i: (0, 0, i))],
            out_specs=pl.BlockSpec((c, tm), lambda i: (0, i)),
        ),
        compiler_params=pltpu.CompilerParams(
            dimension_semantics=("parallel",),
            vmem_limit_bytes=_VMEM_LIMIT,
        ),
        cost_estimate=pl.CostEstimate(
            flops=0, transcendentals=0, bytes_accessed=bytes_acc),
    )(p_t)
    return jnp.transpose(out_t[:, :m].reshape(c, n, ho, wo), (1, 2, 3, 0))


# --------------------------- Parameter creation -----------------------------

def fold_bn(gamma, beta, mean, var, eps=1e-5):
    scale = gamma / jnp.sqrt(var + eps)
    bias = beta - mean * scale
    return scale.astype(jnp.float32), bias.astype(jnp.float32)


def make_conv_bn_params(key, in_ch, out_ch, ks):
    kw_, kg, kb, km, kv = jax.random.split(key, 5)
    w = 0.1 * jax.random.normal(kw_, (out_ch, in_ch, ks, ks), dtype=jnp.float32)
    gamma = 1.0 + 0.1 * jax.random.normal(kg, (out_ch,), dtype=jnp.float32)
    beta = 0.1 * jax.random.normal(kb, (out_ch,), dtype=jnp.float32)
    mean = 0.1 * jax.random.normal(km, (out_ch,), dtype=jnp.float32)
    var = jax.random.uniform(kv, (out_ch,), minval=0.5, maxval=1.5, dtype=jnp.float32)
    scale, bias = fold_bn(gamma, beta, mean, var)
    return {"w": w, "scale": scale, "bias": bias}


def make_stem_params(key):
    k1, k2, k3, k4 = jax.random.split(key, 4)
    return {
        "conv": make_conv_bn_params(k1, 3, 16, 3),      # stride 2, pad 1
        "left0": make_conv_bn_params(k2, 16, 8, 1),     # stride 1, pad 0
        "left1": make_conv_bn_params(k3, 8, 16, 3),     # stride 2, pad 1
        "fuse": make_conv_bn_params(k4, 32, 16, 3),     # stride 1, pad 1
    }


# ------------------------------ StemBlock -----------------------------------

def stem_block(x_nchw, params, compute_dtype=jnp.bfloat16):
    """StemBlock forward. Input NCHW (PyTorch layout), output NCHW f32."""
    x = jnp.transpose(x_nchw, (0, 2, 3, 1)).astype(jnp.float32)  # -> NHWC

    # conv(3->16, s2) fused with left[0] 1x1 conv(16->8) in one kernel.
    feat, fl = stem_head(x, params["conv"], params["left0"], compute_dtype)

    # left[1]: 3x3 s2 (8->16)
    fl = conv_bn_relu(fl, params["left1"], stride=2, padding=1,
                      compute_dtype=compute_dtype)

    # right: maxpool 3x3 s2 p1
    fr = maxpool2d(feat)

    fused_in = jnp.concatenate([fl, fr], axis=-1)  # channel concat, left first

    out = conv_bn_relu(fused_in, params["fuse"], stride=1, padding=1,
                       compute_dtype=compute_dtype, out_dtype=jnp.float32)
    return jnp.transpose(out, (0, 3, 1, 2))        # -> NCHW


# ------------------------- Pure-JAX reference check --------------------------

def _ref_conv_bn_relu(x_nhwc, w_oihw, scale, bias, stride, padding):
    y = lax.conv_general_dilated(
        x_nhwc, w_oihw,
        window_strides=(stride, stride),
        padding=[(padding, padding), (padding, padding)],
        dimension_numbers=("NHWC", "OIHW", "NHWC"),
    )
    return jnp.maximum(y * scale[None, None, None, :] + bias[None, None, None, :], 0.0)


def _ref_maxpool(x_nhwc):
    return lax.reduce_window(
        x_nhwc, -jnp.inf, lax.max,
        window_dimensions=(1, 3, 3, 1),
        window_strides=(1, 2, 2, 1),
        padding=((0, 0), (1, 1), (1, 1), (0, 0)),
    )


def stem_block_ref(x_nchw, params):
    x = jnp.transpose(x_nchw, (0, 2, 3, 1)).astype(jnp.float32)
    p = params["conv"]
    feat = _ref_conv_bn_relu(x, p["w"], p["scale"], p["bias"], 2, 1)
    p = params["left0"]
    fl = _ref_conv_bn_relu(feat, p["w"], p["scale"], p["bias"], 1, 0)
    p = params["left1"]
    fl = _ref_conv_bn_relu(fl, p["w"], p["scale"], p["bias"], 2, 1)
    fr = _ref_maxpool(feat)
    fused_in = jnp.concatenate([fl, fr], axis=-1)
    p = params["fuse"]
    out = _ref_conv_bn_relu(fused_in, p["w"], p["scale"], p["bias"], 1, 1)
    return jnp.transpose(out, (0, 3, 1, 2))


# --------------------------------- main --------------------------------------

if __name__ == "__main__":
    key = jax.random.PRNGKey(0)
    kx, kp = jax.random.split(key)

    # PyTorch conv input layout NCHW: (batch=2, channels=3, H=16, W=16)
    x = jax.random.normal(kx, (2, 3, 16, 16), dtype=jnp.float32)
    params = make_stem_params(kp)

    fwd = jax.jit(stem_block, static_argnames=("compute_dtype",))

    ref = jax.block_until_ready(stem_block_ref(x, params))

    # Exact-math path (f32 MXU) -> tight tolerance vs lax.conv reference.
    out_f32 = jax.block_until_ready(fwd(x, params, compute_dtype=jnp.float32))
    assert out_f32.shape == (2, 16, 4, 4), out_f32.shape
    assert jnp.allclose(out_f32, ref, atol=1e-4, rtol=1e-4), (
        float(jnp.max(jnp.abs(out_f32 - ref))))

    # Fast path: bf16 MXU operands + bf16-resident intermediate activations.
    out_bf16 = jax.block_until_ready(fwd(x, params, compute_dtype=jnp.bfloat16))
    assert out_bf16.shape == (2, 16, 4, 4), out_bf16.shape
    rel_err = float(jnp.linalg.norm(out_bf16 - ref) /
                    (jnp.linalg.norm(ref) + 1e-12))
    assert rel_err < 5e-2, rel_err

    print("KERNEL_OK")
</pallas_src>

<mosaic_0001>
module attributes {stable_mosaic.version = 11 : i64} {
  func.func @_stem_head_kernel(%arg0: i32, %arg1: memref<16x27xf32, #tpu.memory_space<vmem>>, %arg2: memref<16x1xf32, #tpu.memory_space<vmem>>, %arg3: memref<8x16xf32, #tpu.memory_space<vmem>>, %arg4: memref<8x1xf32, #tpu.memory_space<vmem>>, %arg5: memref<27x128xf32, #tpu.memory_space<vmem>>, %arg6: memref<16x128xf32, #tpu.memory_space<vmem>>, %arg7: memref<8x128xf32, #tpu.memory_space<vmem>>) attributes {dimension_semantics = [#tpu.dimension_semantics<parallel>], iteration_bounds = array<i64: 1>, scalar_prefetch = 0 : i64, scratch_operands = 0 : i64, tpu.core_type = #tpu.core_type<tc>, window_params = [{pipeline_mode = #tpu.pipeline_mode<synchronous>, transform_indices = @transform_0, window_bounds = array<i64: 16, 27>}, {pipeline_mode = #tpu.pipeline_mode<synchronous>, transform_indices = @transform_1, window_bounds = array<i64: 16, 1>}, {pipeline_mode = #tpu.pipeline_mode<synchronous>, transform_indices = @transform_2, window_bounds = array<i64: 8, 16>}, {pipeline_mode = #tpu.pipeline_mode<synchronous>, transform_indices = @transform_3, window_bounds = array<i64: 8, 1>}, {transform_indices = @transform_4, window_bounds = array<i64: 27, 128>}, {transform_indices = @transform_5, window_bounds = array<i64: 16, 128>}, {transform_indices = @transform_6, window_bounds = array<i64: 8, 128>}]} {
    %c0 = arith.constant 0 : index
    %c0_0 = arith.constant 0 : index
    %0 = vector.load %arg1[%c0, %c0_0] : memref<16x27xf32, #tpu.memory_space<vmem>>, vector<16x27xf32>
    %c0_1 = arith.constant 0 : index
    %c0_2 = arith.constant 0 : index
    %1 = vector.load %arg5[%c0_1, %c0_2] : memref<27x128xf32, #tpu.memory_space<vmem>>, vector<27x128xf32>
    %cst = arith.constant dense<0.000000e+00> : vector<16x128xf32>
    %2 = tpu.matmul %0, %1, %cst {dimension_numbers = #tpu.dot_dimension_numbers<[1], [0], [0], [1], [0, 0, 1, 1], [], []>} : vector<16x27xf32>, vector<27x128xf32>, vector<16x128xf32> -> vector<16x128xf32>
    %c0_3 = arith.constant 0 : index
    %c0_4 = arith.constant 0 : index
    %3 = vector.load %arg2[%c0_3, %c0_4] : memref<16x1xf32, #tpu.memory_space<vmem>>, vector<16x1xf32>
    %4 = vector.broadcast %3 : vector<16x1xf32> to vector<16x128xf32>
    %5 = arith.addf %2, %4 : vector<16x128xf32>
    %cst_5 = arith.constant 0.000000e+00 : f32
    %6 = vector.broadcast %cst_5 : f32 to vector<16x128xf32>
    %7 = arith.maximumf %5, %6 : vector<16x128xf32>
    %c0_6 = arith.constant 0 : index
    %c0_7 = arith.constant 0 : index
    %8 = vector.load %arg6[%c0_6, %c0_7] : memref<16x128xf32, #tpu.memory_space<vmem>>, vector<16x128xf32>
    tpu.vector_store %arg6[%c0_6, %c0_7], %7 {strides = array<i32>} : memref<16x128xf32, #tpu.memory_space<vmem>>, vector<16x128xf32>,
    %c0_8 = arith.constant 0 : index
    %c0_9 = arith.constant 0 : index
    %9 = vector.load %arg3[%c0_8, %c0_9] : memref<8x16xf32, #tpu.memory_space<vmem>>, vector<8x16xf32>
    %cst_10 = arith.constant dense<0.000000e+00> : vector<8x128xf32>
    %10 = tpu.matmul %9, %7, %cst_10 {dimension_numbers = #tpu.dot_dimension_numbers<[1], [0], [0], [1], [0, 0, 1, 1], [], []>} : vector<8x16xf32>, vector<16x128xf32>, vector<8x128xf32> -> vector<8x128xf32>
    %c0_11 = arith.constant 0 : index
    %c0_12 = arith.constant 0 : index
    %11 = vector.load %arg4[%c0_11, %c0_12] : memref<8x1xf32, #tpu.memory_space<vmem>>, vector<8x1xf32>
    %12 = vector.broadcast %11 : vector<8x1xf32> to vector<8x128xf32>
    %13 = arith.addf %10, %12 : vector<8x128xf32>
    %cst_13 = arith.constant 0.000000e+00 : f32
    %14 = vector.broadcast %cst_13 : f32 to vector<8x128xf32>
    %15 = arith.maximumf %13, %14 : vector<8x128xf32>
    %c0_14 = arith.constant 0 : index
    %c0_15 = arith.constant 0 : index
    %16 = vector.load %arg7[%c0_14, %c0_15] : memref<8x128xf32, #tpu.memory_space<vmem>>, vector<8x128xf32>
    tpu.vector_store %arg7[%c0_14, %c0_15], %15 {strides = array<i32>} : memref<8x128xf32, #tpu.memory_space<vmem>>, vector<8x128xf32>,
    return
  }
  func.func @transform_0(%arg0: i32) -> (i32, i32) {
    %c0_i32 = arith.constant 0 : i32
    %c0_i32_0 = arith.constant 0 : i32
    %c0_i32_1 = arith.constant 0 : i32
    return %c0_i32, %c0_i32_0 : i32, i32
  }
  func.func @transform_1(%arg0: i32) -> (i32, i32) {
    %c0_i32 = arith.constant 0 : i32
    %c0_i32_0 = arith.constant 0 : i32
    %c0_i32_1 = arith.constant 0 : i32
    return %c0_i32, %c0_i32_0 : i32, i32
  }
  func.func @transform_2(%arg0: i32) -> (i32, i32) {
    %c0_i32 = arith.constant 0 : i32
    %c0_i32_0 = arith.constant 0 : i32
    %c0_i32_1 = arith.constant 0 : i32
    return %c0_i32, %c0_i32_0 : i32, i32
  }
  func.func @transform_3(%arg0: i32) -> (i32, i32) {
    %c0_i32 = arith.constant 0 : i32
    %c0_i32_0 = arith.constant 0 : i32
    %c0_i32_1 = arith.constant 0 : i32
    return %c0_i32, %c0_i32_0 : i32, i32
  }
  func.func @transform_4(%arg0: i32) -> (i32, i32) {
    %c0_i32 = arith.constant 0 : i32
    %c0_i32_0 = arith.constant 0 : i32
    return %c0_i32, %arg0 : i32, i32
  }
  func.func @transform_5(%arg0: i32) -> (i32, i32) {
    %c0_i32 = arith.constant 0 : i32
    %c0_i32_0 = arith.constant 0 : i32
    return %c0_i32, %arg0 : i32, i32
  }
  func.func @transform_6(%arg0: i32) -> (i32, i32) {
    %c0_i32 = arith.constant 0 : i32
    %c0_i32_0 = arith.constant 0 : i32
    return %c0_i32, %arg0 : i32, i32
  }
}

module attributes {stable_mosaic.version = 11 : i64} {
  func.func @_conv_bn_relu_kernel(%arg0: i32, %arg1: memref<16x72xf32, #tpu.memory_space<vmem>>, %arg2: memref<16x1xf32, #tpu.memory_space<vmem>>, %arg3: memref<72x128xf32, #tpu.memory_space<vmem>>, %arg4: memref<16x128xf32, #tpu.memory_space<vmem>>) attributes {dimension_semantics = [#tpu.dimension_semantics<parallel>], iteration_bounds = array<i64: 1>, scalar_prefetch = 0 : i64, scratch_operands = 0 : i64, tpu.core_type = #tpu.core_type<tc>, window_params = [{pipeline_mode = #tpu.pipeline_mode<synchronous>, transform_indices = @transform_0, window_bounds = array<i64: 16, 72>}, {pipeline_mode = #tpu.pipeline_mode<synchronous>, transform_indices = @transform_1, window_bounds = array<i64: 16, 1>}, {transform_indices = @transform_2, window_bounds = array<i64: 72, 128>}, {transform_indices = @transform_3, window_bounds = array<i64: 16, 128>}]} {
    %c0 = arith.constant 0 : index
    %c0_0 = arith.constant 0 : index
    %0 = vector.load %arg1[%c0, %c0_0] : memref<16x72xf32, #tpu.memory_space<vmem>>, vector<16x72xf32>
    %c0_1 = arith.constant 0 : index
    %c0_2 = arith.constant 0 : index
    %1 = vector.load %arg3[%c0_1, %c0_2] : memref<72x128xf32, #tpu.memory_space<vmem>>, vector<72x128xf32>
    %cst = arith.constant dense<0.000000e+00> : vector<16x128xf32>
    %2 = tpu.matmul %0, %1, %cst {dimension_numbers = #tpu.dot_dimension_numbers<[1], [0], [0], [1], [0, 0, 1, 1], [], []>} : vector<16x72xf32>, vector<72x128xf32>, vector<16x128xf32> -> vector<16x128xf32>
    %c0_3 = arith.constant 0 : index
    %c0_4 = arith.constant 0 : index
    %3 = vector.load %arg2[%c0_3, %c0_4] : memref<16x1xf32, #tpu.memory_space<vmem>>, vector<16x1xf32>
    %4 = vector.broadcast %3 : vector<16x1xf32> to vector<16x128xf32>
    %5 = arith.addf %2, %4 : vector<16x128xf32>
    %cst_5 = arith.constant 0.000000e+00 : f32
    %6 = vector.broadcast %cst_5 : f32 to vector<16x128xf32>
    %7 = arith.maximumf %5, %6 : vector<16x128xf32>
    %c0_6 = arith.constant 0 : index
    %c0_7 = arith.constant 0 : index
    %8 = vector.load %arg4[%c0_6, %c0_7] : memref<16x128xf32, #tpu.memory_space<vmem>>, vector<16x128xf32>
    tpu.vector_store %arg4[%c0_6, %c0_7], %7 {strides = array<i32>} : memref<16x128xf32, #tpu.memory_space<vmem>>, vector<16x128xf32>,
    return
  }
  func.func @transform_0(%arg0: i32) -> (i32, i32) {
    %c0_i32 = arith.constant 0 : i32
    %c0_i32_0 = arith.constant 0 : i32
    %c0_i32_1 = arith.constant 0 : i32
    return %c0_i32, %c0_i32_0 : i32, i32
  }
  func.func @transform_1(%arg0: i32) -> (i32, i32) {
    %c0_i32 = arith.constant 0 : i32
    %c0_i32_0 = arith.constant 0 : i32
    %c0_i32_1 = arith.constant 0 : i32
    return %c0_i32, %c0_i32_0 : i32, i32
  }
  func.func @transform_2(%arg0: i32) -> (i32, i32) {
    %c0_i32 = arith.constant 0 : i32
    %c0_i32_0 = arith.constant 0 : i32
    return %c0_i32, %arg0 : i32, i32
  }
  func.func @transform_3(%arg0: i32) -> (i32, i32) {
    %c0_i32 = arith.constant 0 : i32
    %c0_i32_0 = arith.constant 0 : i32
    return %c0_i32, %arg0 : i32, i32
  }
}

module attributes {stable_mosaic.version = 11 : i64} {
  func.func @_maxpool_kernel(%arg0: i32, %arg1: memref<9x16x128xf32, #tpu.memory_space<vmem>>, %arg2: memref<16x128xf32, #tpu.memory_space<vmem>>) attributes {dimension_semantics = [#tpu.dimension_semantics<parallel>], iteration_bounds = array<i64: 1>, scalar_prefetch = 0 : i64, scratch_operands = 0 : i64, tpu.core_type = #tpu.core_type<tc>, window_params = [{transform_indices = @transform_0, window_bounds = array<i64: 9, 16, 128>}, {transform_indices = @transform_1, window_bounds = array<i64: 16, 128>}]} {
    %c0 = arith.constant 0 : index
    %c0_0 = arith.constant 0 : index
    %c0_1 = arith.constant 0 : index
    %0 = vector.load %arg1[%c0, %c0_0, %c0_1] : memref<9x16x128xf32, #tpu.memory_space<vmem>>, vector<9x16x128xf32>
    %cst = arith.constant dense<0xFF800000> : vector<16x128xf32>
    %1 = vector.multi_reduction <maximumf>, %0, %cst [0] : vector<9x16x128xf32> to vector<16x128xf32>
    %c0_2 = arith.constant 0 : index
    %c0_3 = arith.constant 0 : index
    %2 = vector.load %arg2[%c0_2, %c0_3] : memref<16x128xf32, #tpu.memory_space<vmem>>, vector<16x128xf32>
    tpu.vector_store %arg2[%c0_2, %c0_3], %1 {strides = array<i32>} : memref<16x128xf32, #tpu.memory_space<vmem>>, vector<16x128xf32>,
    return
  }
  func.func @transform_0(%arg0: i32) -> (i32, i32, i32) {
    %c0_i32 = arith.constant 0 : i32
    %c0_i32_0 = arith.constant 0 : i32
    %c0_i32_1 = arith.constant 0 : i32
    return %c0_i32, %c0_i32_0, %arg0 : i32, i32, i32
  }
  func.func @transform_1(%arg0: i32) -> (i32, i32) {
    %c0_i32 = arith.constant 0 : i32
    %c0_i32_0 = arith.constant 0 : i32
    return %c0_i32, %arg0 : i32, i32
  }
}

module attributes {stable_mosaic.version = 11 : i64} {
  func.func @_conv_bn_relu_kernel(%arg0: i32, %arg1: memref<16x288xf32, #tpu.memory_space<vmem>>, %arg2: memref<16x1xf32, #tpu.memory_space<vmem>>, %arg3: memref<288x128xf32, #tpu.memory_space<vmem>>, %arg4: memref<16x128xf32, #tpu.memory_space<vmem>>) attributes {dimension_semantics = [#tpu.dimension_semantics<parallel>], iteration_bounds = array<i64: 1>, scalar_prefetch = 0 : i64, scratch_operands = 0 : i64, tpu.core_type = #tpu.core_type<tc>, window_params = [{pipeline_mode = #tpu.pipeline_mode<synchronous>, transform_indices = @transform_0, window_bounds = array<i64: 16, 288>}, {pipeline_mode = #tpu.pipeline_mode<synchronous>, transform_indices = @transform_1, window_bounds = array<i64: 16, 1>}, {transform_indices = @transform_2, window_bounds = array<i64: 288, 128>}, {transform_indices = @transform_3, window_bounds = array<i64: 16, 128>}]} {
    %c0 = arith.constant 0 : index
    %c0_0 = arith.constant 0 : index
    %0 = vector.load %arg1[%c0, %c0_0] : memref<16x288xf32, #tpu.memory_space<vmem>>, vector<16x288xf32>
    %c0_1 = arith.constant 0 : index
    %c0_2 = arith.constant 0 : index
    %1 = vector.load %arg3[%c0_1, %c0_2] : memref<288x128xf32, #tpu.memory_space<vmem>>, vector<288x128xf32>
    %cst = arith.constant dense<0.000000e+00> : vector<16x128xf32>
    %2 = tpu.matmul %0, %1, %cst {dimension_numbers = #tpu.dot_dimension_numbers<[1], [0], [0], [1], [0, 0, 1, 1], [], []>} : vector<16x288xf32>, vector<288x128xf32>, vector<16x128xf32> -> vector<16x128xf32>
    %c0_3 = arith.constant 0 : index
    %c0_4 = arith.constant 0 : index
    %3 = vector.load %arg2[%c0_3, %c0_4] : memref<16x1xf32, #tpu.memory_space<vmem>>, vector<16x1xf32>
    %4 = vector.broadcast %3 : vector<16x1xf32> to vector<16x128xf32>
    %5 = arith.addf %2, %4 : vector<16x128xf32>
    %cst_5 = arith.constant 0.000000e+00 : f32
    %6 = vector.broadcast %cst_5 : f32 to vector<16x128xf32>
    %7 = arith.maximumf %5, %6 : vector<16x128xf32>
    %c0_6 = arith.constant 0 : index
    %c0_7 = arith.constant 0 : index
    %8 = vector.load %arg4[%c0_6, %c0_7] : memref<16x128xf32, #tpu.memory_space<vmem>>, vector<16x128xf32>
    tpu.vector_store %arg4[%c0_6, %c0_7], %7 {strides = array<i32>} : memref<16x128xf32, #tpu.memory_space<vmem>>, vector<16x128xf32>,
    return
  }
  func.func @transform_0(%arg0: i32) -> (i32, i32) {
    %c0_i32 = arith.constant 0 : i32
    %c0_i32_0 = arith.constant 0 : i32
    %c0_i32_1 = arith.constant 0 : i32
    return %c0_i32, %c0_i32_0 : i32, i32
  }
  func.func @transform_1(%arg0: i32) -> (i32, i32) {
    %c0_i32 = arith.constant 0 : i32
    %c0_i32_0 = arith.constant 0 : i32
    %c0_i32_1 = arith.constant 0 : i32
    return %c0_i32, %c0_i32_0 : i32, i32
  }
  func.func @transform_2(%arg0: i32) -> (i32, i32) {
    %c0_i32 = arith.constant 0 : i32
    %c0_i32_0 = arith.constant 0 : i32
    return %c0_i32, %arg0 : i32, i32
  }
  func.func @transform_3(%arg0: i32) -> (i32, i32) {
    %c0_i32 = arith.constant 0 : i32
    %c0_i32_0 = arith.constant 0 : i32
    return %c0_i32, %arg0 : i32, i32
  }
}

</mosaic_0001>

<bundles_post_ra>
// kernel: stem_block.5
= control target key start
LH: loop header
LB: loop body
LE: loop exit
PB: predicated region body
PF: predicated region fallthrough
CT: control target
= control target key end

     0   :  { %v179_v3 = vmov 0   ;;  %vm37_vm0 = vcmask 588800   ;;  %s247_s2 = inlined_call_operand.vmem [shape: f32[72,128], index: 2, kind: input, shape index: {}]   ;;  %s248_s0 = inlined_call_operand.vmem [shape: f32[16,72], index: 0, kind: input, shape index: {}]   ;;  %s249_s1 = inlined_call_operand.vmem [shape: f32[16,1], index: 1, kind: input, shape index: {}]   ;;  %s250_s3 = inlined_call_operand.vmem [shape: f32[16,128], index: 3, kind: output, shape index: {}]  }
   0x1   :  { %v16_v0 = vld [vmem:[%s247_s2] sm:$0xff]  ;;  %v17_v1 = vld [vmem:[%s247_s2 + $0x8] sm:$0xff]  ;;  %v18_v2 = vld [vmem:[%s247_s2 + $0x10] sm:$0xff]  ;;  %178 = vset.pattern.permute.xlu0 %v179_v3 }
   0x2   :  { %v161_v4 = vpack.c.bf16 %v17_v1, %v16_v0  ;;  %v19_v5 = vld [vmem:[%s247_s2 + $0x18] sm:$0xff]  ;;  %v20_v7 = vld [vmem:[%s247_s2 + $0x20] sm:$0xff]  ;;  %v21_v8 = vld [vmem:[%s247_s2 + $0x28] sm:$0xff] }
   0x3   :  { %v165_v6 = vpack.c.bf16 %v19_v5, %v18_v2  ;;  %v14_v9 = vld [vmem:[%s248_s0] sm:$0xff]  ;;  %v169_v11 = vpack.c.bf16 %v21_v8, %v20_v7  ;;  %v22_v12 = vld [vmem:[%s247_s2 + $0x30] sm:$0xff]  ;;  %v23_v13 = vld [vmem:[%s247_s2 + $0x38] sm:$0xff] }
   0x4   :  { %162 = vmatprep.subr.bf16.mxu0 %v161_v4  ;;  %v25_v10 = vld [vmem:[%s249_s1] sm:$0xff]  ;;  %158 = vmatprep.mubr.msk.f32.mxu0 %vm37_vm0, %v14_v9  ;;  %v26_v14 = vld [vmem:[%s249_s1 + $0x8] sm:$0xff]  ;;  %v173_v15 = vpack.c.bf16 %v23_v13, %v22_v12 }
   0x5   :  { %164 = vmatpush3.bf16.msra.mxu0 %v161_v4  ;;  %29 = vperm.xlu0 %178, %v25_v10   ;;  %v24_v16 = vld [vmem:[%s247_s2 + $0x40] sm:$0xff]  ;;  %v15_v17 = vld [vmem:[%s248_s0 + $0x8] sm:$0xff] }
   0x6   :  { %166 = vmatprep.subr.bf16.mxu0 %v165_v6 }
   0x9   :  { %168 = vmatpush3.bf16.msra.mxu0 %v165_v6  ;;  %34 = vperm.xlu0 %178, %v26_v14  }
   0xa   :  { %170 = vmatprep.subr.bf16.mxu0 %v169_v11 }
   0xd   :  { %172 = vmatpush3.bf16.msra.mxu0 %v169_v11 }
   0xe   :  { %174 = vmatprep.subr.bf16.mxu0 %v173_v15 }
  0x11   :  { %176 = vmatpush3.bf16.msra.mxu0 %v173_v15 }
  0x12   :  { %156 = vmatprep.subr.mxu0 %v24_v16 }
  0x15   :  { %157 = vmatpush3.msra.mxu0 %v24_v16 }
  0x16   :  { %159 = vmatmul.mubr.msk.f32.vlgmr.msra.gmra.mrb[0].mxu0 %vm37_vm0, %v15_v17 }
  0x84   :  { %v30_v18 = vpop.permute.xlu0 %29 }
  0x88   :  { %v35_v19 = vpop.permute.xlu0 %34 }
  0xe9   :  { %v160_v20 = vpop.f32.mrb[0].mxu0 }
  0xea   :  { %v116_v21 = vadd.f32 %v160_v20, %v35_v19  ;;  %v110_v22 = vpop.f32.mrb[1].mxu0 }
  0xeb   :  { %v111_v23 = vadd.f32 %v110_v22, %v30_v18 }
  0xec   :  { %v120_v24 = vmax.f32 %v116_v21, 0.0 }
  0xed   :  { %v119_v25 = vmax.f32 %v111_v23, 0.0 }
  0xee   :  { %122 = vst [vmem:[%s250_s3 + $0x8] sm:$0xff] %v120_v24 }
  0xef   :  { %121 = vst [vmem:[%s250_s3] sm:$0xff] %v119_v25 }

// kernel: stem_block.4
= control target key start
LH: loop header
LB: loop body
LE: loop exit
PB: predicated region body
PF: predicated region fallthrough
CT: control target
= control target key end

     0   :  { %vm47_vm0 = vcmask 1042432   ;;  %vm40_vm1 = vcmask 220160   ;;  %v272_v3 = vmov 0   ;;  %vm273_vm2 = vmmov 1   ;;  %s354_s4 = inlined_call_operand.vmem [shape: f32[27,128], index: 4, kind: input, shape index: {}]   ;;  %s355_s0 = inlined_call_operand.vmem [shape: f32[16,27], index: 0, kind: input, shape index: {}]   ;;  %s356_s1 = inlined_call_operand.vmem [shape: f32[16,1], index: 1, kind: input, shape index: {}]   ;;  %s357_s3 = inlined_call_operand.vmem [shape: f32[8,1], index: 3, kind: input, shape index: {}]   ;;  %s358_s5 = inlined_call_operand.vmem [shape: f32[16,128], index: 5, kind: output, shape index: {0}]   ;;  %s359_s2 = inlined_call_operand.vmem [shape: f32[8,16], index: 2, kind: input, shape index: {}]   ;;  %s360_s6 = inlined_call_operand.vmem [shape: f32[8,128], index: 6, kind: output, shape index: {1}]  }
   0x1   :  { %v24_v0 = vld [vmem:[%s354_s4] sm:$0xff]  ;;  %v25_v1 = vld [vmem:[%s354_s4 + $0x8] sm:$0xff]  ;;  %v26_v2 = vld [vmem:[%s354_s4 + $0x10] sm:$0xff]  ;;  %270 = vset.pattern.permute.xlu0 %v272_v3  ;;  %271 = vset.pattern.permute.xlu1 %v272_v3  ;;  %v274_v11 = vmov 0.0|0.0   ;;  %vm275_vm4 = vmmov 0   ;;  %v276_v12 = vmov 0.0  }
   0x2   :  { %v252_v4 = vpack.c.bf16 %v25_v1, %v24_v0  ;;  %v27_v5 = vld [vmem:[%s354_s4 + $0x18] sm:$0x7]  ;;  %v22_v6 = vld [vmem:[%s355_s0] sm:$0xff]  ;;  %vm257_vm3 = vmpackc.low %vm47_vm0, %vm273_vm2  ;;  %262 = vmatprep.subr.bf16.mxu1 %v274_v11  ;;  %249 = vmatprep.mubr.msk.f32.mxu1 %vm275_vm4, %v276_v12  ;;  %vm137_vm5 = vcmask 130048  }
   0x3   :  { %v256_v7 = vpack.c.bf16 %v27_v5, %v26_v2  ;;  %242 = vmatprep.mubr.msk.f32.mxu0 %vm40_vm1, %v22_v6  ;;  %v28_v8 = vld [vmem:[%s356_s1] sm:$0xff]  ;;  %v29_v9 = vld [vmem:[%s356_s1 + $0x8] sm:$0xff] }
   0x4   :  { %253 = vmatprep.subr.bf16.mxu0 %v252_v4  ;;  %32 = vperm.xlu0 %270, %v28_v8   ;;  %v23_v10 = vld [vmem:[%s355_s0 + $0x8] sm:$0xff]  ;;  %v131_v13 = vld [vmem:[%s357_s3] sm:$0xff] }
   0x5   :  { %255 = vmatpush3.bf16.msra.mxu0 %v252_v4  ;;  %134 = vperm.xlu1 %271, %v131_v13   ;;  %v130_v23 = vld [vmem:[%s359_s2] sm:$0xff] }
   0x6   :  { %258 = vmatprep.subr.msk.bf16.mxu0 %vm257_vm3, %v256_v7 }
   0x8   :  { %37 = vperm.xlu0 %270, %v29_v9  }
   0x9   :  { %261 = vmatpush3.bf16.msk.msra.mxu0 %vm257_vm3, %v256_v7 }
   0xc   :  { %243 = vmatmul.mubr.msk.f32.vlgmr.msra.gmra.mrb[0].mxu0 %vm40_vm1, %v23_v10 }
  0x83   :  { %v33_v14 = vpop.permute.xlu0 %32 }
  0x84   :  { %v135_v24 = vpop.permute.xlu1 %134 }
  0x87   :  { %v38_v15 = vpop.permute.xlu0 %37 }
  0xdf   :  { %v244_v16 = vpop.f32.mrb[0].mxu0 }
  0xe0   :  { %v123_v17 = vadd.f32 %v244_v16, %v38_v15  ;;  %v117_v18 = vpop.f32.mrb[1].mxu0 }
  0xe1   :  { %v118_v19 = vadd.f32 %v117_v18, %v33_v14 }
  0xe2   :  { %v127_v20 = vmax.f32 %v123_v17, 0.0 }
  0xe3   :  { %v126_v21 = vmax.f32 %v118_v19, 0.0 }
  0xe4   :  { %129 = vst [vmem:[%s358_s5 + $0x8] sm:$0xff] %v127_v20 }
  0xe5   :  { %128 = vst [vmem:[%s358_s5] sm:$0xff] %v126_v21  ;;  %v263_v22 = vpack.c.bf16 %v127_v20, %v126_v21 }
  0xe7   :  { %264 = vmatpush3.bf16.msra.mxu1 %v263_v22 }
  0xea   :  { %250 = vmatmul.mubr.msk.f32.vlgmr.msra.gmra.mrb[0].mxu1 %vm137_vm5, %v130_v23 }
 0x1bd   :  { %v207_v25 = vpop.f32.mrb[0].mxu1 }
 0x1be   :  { %v208_v26 = vadd.f32 %v207_v25, %v135_v24  ;;  %v251_v27 = vpop.f32.mrb[1].mxu1 }
 0x1c0   :  { %v211_v28 = vmax.f32 %v208_v26, 0.0 }
 0x1c2   :  { %212 = vst [vmem:[%s360_s6] sm:$0xff] %v211_v28 }

// kernel: stem_block.6
= control target key start
LH: loop header
LB: loop body
LE: loop exit
PB: predicated region body
PF: predicated region fallthrough
CT: control target
= control target key end

     0   :  { %s118_s0 = inlined_call_operand.vmem [shape: f32[9,16,128], index: 0, kind: input, shape index: {}]   ;;  %s119_s1 = inlined_call_operand.vmem [shape: f32[16,128], index: 1, kind: output, shape index: {}]  }
   0x1   :  { %v8_v0 = vld [vmem:[%s118_s0] sm:$0xff]  ;;  %v10_v1 = vld [vmem:[%s118_s0 + $0x10] sm:$0xff]  ;;  %v9_v12 = vld [vmem:[%s118_s0 + $0x8] sm:$0xff] }
   0x2   :  { %v12_v2 = vld [vmem:[%s118_s0 + $0x20] sm:$0xff]  ;;  %v14_v3 = vld [vmem:[%s118_s0 + $0x30] sm:$0xff]  ;;  %v11_v13 = vld [vmem:[%s118_s0 + $0x18] sm:$0xff] }
   0x3   :  { %v16_v4 = vld [vmem:[%s118_s0 + $0x40] sm:$0xff]  ;;  %v18_v5 = vld [vmem:[%s118_s0 + $0x50] sm:$0xff]  ;;  %v26_v6 = vmax.f32 %v8_v0, %v12_v2  ;;  %v27_v10 = vmax.f32 %v10_v1, %v14_v3  ;;  %v13_v14 = vld [vmem:[%s118_s0 + $0x28] sm:$0xff] }
   0x4   :  { %v20_v7 = vld [vmem:[%s118_s0 + $0x60] sm:$0xff]  ;;  %v22_v8 = vld [vmem:[%s118_s0 + $0x70] sm:$0xff]  ;;  %v15_v16 = vld [vmem:[%s118_s0 + $0x38] sm:$0xff]  ;;  %v34_v19 = vmax.f32 %v9_v12, %v13_v14 }
   0x5   :  { %v24_v9 = vld [vmem:[%s118_s0 + $0x80] sm:$0xff]  ;;  %v28_v11 = vmax.f32 %v26_v6, %v16_v4  ;;  %v29_v15 = vmax.f32 %v27_v10, %v18_v5  ;;  %v17_v17 = vld [vmem:[%s118_s0 + $0x48] sm:$0xff]  ;;  %v19_v18 = vld [vmem:[%s118_s0 + $0x58] sm:$0xff]  ;;  %v35_v22 = vmax.f32 %v11_v13, %v15_v16 }
   0x6   :  { %v21_v21 = vld [vmem:[%s118_s0 + $0x68] sm:$0xff]  ;;  %v23_v24 = vld [vmem:[%s118_s0 + $0x78] sm:$0xff]  ;;  %v36_v25 = vmax.f32 %v34_v19, %v17_v17 }
   0x7   :  { %v30_v20 = vmax.f32 %v28_v11, %v20_v7  ;;  %v31_v23 = vmax.f32 %v29_v15, %v22_v8  ;;  %v25_v27 = vld [vmem:[%s118_s0 + $0x88] sm:$0xff]  ;;  %v37_v28 = vmax.f32 %v35_v22, %v19_v18 }
   0x8   :  { %v38_v29 = vmax.f32 %v36_v25, %v21_v21 }
   0x9   :  { %v32_v26 = vmax.f32 %v30_v20, %v24_v9  ;;  %v39_v31 = vmax.f32 %v37_v28, %v23_v24 }
   0xa   :  { %v40_v32 = vmax.f32 %v38_v29, %v25_v27 }
   0xb   :  { %v33_v30 = vmax.f32 %v32_v26, %v31_v23 }
   0xc   :  { %v41_v33 = vmax.f32 %v40_v32, %v39_v31 }
   0xd   :  { %42 = vst [vmem:[%s119_s1] sm:$0xff] %v33_v30 }
   0xe   :  { %43 = vst [vmem:[%s119_s1 + $0x8] sm:$0xff] %v41_v33 }

// kernel: stem_block.7
= control target key start
LH: loop header
LB: loop body
LE: loop exit
PB: predicated region body
PF: predicated region fallthrough
CT: control target
= control target key end

     0   :  { %v332_v3 = vmov 0   ;;  %vm68_vm0 = vcmask 261120   ;;  %s493_s2 = inlined_call_operand.vmem [shape: f32[288,128], index: 2, kind: input, shape index: {}]   ;;  %s494_s0 = inlined_call_operand.vmem [shape: f32[16,288], index: 0, kind: input, shape index: {}]   ;;  %s495_s1 = inlined_call_operand.vmem [shape: f32[16,1], index: 1, kind: input, shape index: {}]   ;;  %s496_s3 = inlined_call_operand.vmem [shape: f32[16,128], index: 3, kind: output, shape index: {}]  }
   0x1   :  { %v36_v0 = vld [vmem:[%s493_s2 + $0x80] sm:$0xff]  ;;  %v37_v1 = vld [vmem:[%s493_s2 + $0x88] sm:$0xff]  ;;  %331 = vset.pattern.permute.xlu0 %v332_v3  ;;  %v38_v6 = vld [vmem:[%s493_s2 + $0x90] sm:$0xff] }
   0x2   :  { %v20_v2 = vld [vmem:[%s493_s2] sm:$0xff]  ;;  %v290_v4 = vpack.c.bf16 %v37_v1, %v36_v0  ;;  %v21_v5 = vld [vmem:[%s493_s2 + $0x8] sm:$0xff]  ;;  %v39_v7 = vld [vmem:[%s493_s2 + $0x98] sm:$0xff] }
   0x3   :  { %v292_v8 = vpack.c.bf16 %v21_v5, %v20_v2  ;;  %v294_v9 = vpack.c.bf16 %v39_v7, %v38_v6  ;;  %v22_v10 = vld [vmem:[%s493_s2 + $0x10] sm:$0xff]  ;;  %v23_v11 = vld [vmem:[%s493_s2 + $0x18] sm:$0xff]  ;;  %v40_v12 = vld [vmem:[%s493_s2 + $0xa0] sm:$0xff] }
   0x4   :  { %291 = vmatprep.subr.bf16.mxu0 %v290_v4  ;;  %v41_v13 = vld [vmem:[%s493_s2 + $0xa8] sm:$0xff]  ;;  %v296_v14 = vpack.c.bf16 %v23_v11, %v22_v10  ;;  %v24_v16 = vld [vmem:[%s493_s2 + $0x20] sm:$0xff]  ;;  %v42_v18 = vld [vmem:[%s493_s2 + $0xb0] sm:$0xff] }
   0x5   :  { %293 = vmatpush3.bf16.msra.mxu0 %v292_v8  ;;  %v298_v15 = vpack.c.bf16 %v41_v13, %v40_v12  ;;  %v25_v17 = vld [vmem:[%s493_s2 + $0x28] sm:$0xff]  ;;  %v43_v19 = vld [vmem:[%s493_s2 + $0xb8] sm:$0xff]  ;;  %v26_v22 = vld [vmem:[%s493_s2 + $0x30] sm:$0xff] }
   0x6   :  { %295 = vmatprep.subr.bf16.mxu0 %v294_v9  ;;  %v300_v20 = vpack.c.bf16 %v25_v17, %v24_v16  ;;  %v302_v21 = vpack.c.bf16 %v43_v19, %v42_v18  ;;  %v27_v23 = vld [vmem:[%s493_s2 + $0x38] sm:$0xff]  ;;  %v44_v24 = vld [vmem:[%s493_s2 + $0xc0] sm:$0xff]  ;;  %v45_v25 = vld [vmem:[%s493_s2 + $0xc8] sm:$0xff] }
   0x7   :  { %v52_v26 = vld [vmem:[%s493_s2 + $0x100] sm:$0xff]  ;;  %v53_v27 = vld [vmem:[%s493_s2 + $0x108] sm:$0xff]  ;;  %v304_v30 = vpack.c.bf16 %v27_v23, %v26_v22  ;;  %v54_v31 = vld [vmem:[%s493_s2 + $0x110] sm:$0xff]  ;;  %v306_v33 = vpack.c.bf16 %v45_v25, %v44_v24 }
   0x8   :  { %v322_v28 = vpack.c.bf16 %v53_v27, %v52_v26  ;;  %v15_v29 = vld [vmem:[%s494_s0 + $0x8] sm:$0xff]  ;;  %v55_v32 = vld [vmem:[%s493_s2 + $0x118] sm:$0xff]  ;;  %v28_v34 = vld [vmem:[%s493_s2 + $0x40] sm:$0xff] }
   0x9   :  { %297 = vmatpush3.bf16.msra.mxu0 %v296_v14  ;;  %139 = vmatprep.mubr.f32.mxu0 %v15_v29  ;;  %v29_v35 = vld [vmem:[%s493_s2 + $0x48] sm:$0xff]  ;;  %v326_v36 = vpack.c.bf16 %v55_v32, %v54_v31  ;;  %v16_v37 = vld [vmem:[%s494_s0 + $0x10] sm:$0xff]  ;;  %v47_v39 = vld [vmem:[%s493_s2 + $0xd8] sm:$0xff] }
   0xa   :  { %299 = vmatprep.subr.bf16.mxu0 %v298_v15  ;;  %323 = vmatprep.subr.bf16.mxu1 %v322_v28  ;;  %v46_v38 = vld [vmem:[%s493_s2 + $0xd0] sm:$0xff]  ;;  %v56_v40 = vld [vmem:[%s495_s1] sm:$0xff]  ;;  %v308_v41 = vpack.c.bf16 %v29_v35, %v28_v34  ;;  %v57_v42 = vld [vmem:[%s495_s1 + $0x8] sm:$0xff] }
   0xb   :  { %325 = vmatpush3.bf16.msra.mxu1 %v322_v28  ;;  %287 = vmatprep.mubr.msk.f32.mxu1 %vm68_vm0, %v16_v37  ;;  %v310_v43 = vpack.c.bf16 %v47_v39, %v46_v38  ;;  %v30_v44 = vld [vmem:[%s493_s2 + $0x50] sm:$0xff]  ;;  %v31_v45 = vld [vmem:[%s493_s2 + $0x58] sm:$0xff]  ;;  %v48_v46 = vld [vmem:[%s493_s2 + $0xe0] sm:$0xff] }
   0xc   :  { %327 = vmatprep.subr.bf16.mxu1 %v326_v36  ;;  %60 = vperm.xlu0 %331, %v56_v40   ;;  %v49_v47 = vld [vmem:[%s493_s2 + $0xe8] sm:$0xff]  ;;  %v312_v49 = vpack.c.bf16 %v31_v45, %v30_v44  ;;  %v32_v51 = vld [vmem:[%s493_s2 + $0x60] sm:$0xff]  ;;  %v50_v53 = vld [vmem:[%s493_s2 + $0xf0] sm:$0xff] }
   0xd   :  { %301 = vmatpush3.bf16.msra.mxu0 %v300_v20  ;;  %v19_v48 = vld [vmem:[%s494_s0 + $0x28] sm:$0xff]  ;;  %v314_v50 = vpack.c.bf16 %v49_v47, %v48_v46  ;;  %v51_v54 = vld [vmem:[%s493_s2 + $0xf8] sm:$0xff]  ;;  %v34_v57 = vld [vmem:[%s493_s2 + $0x70] sm:$0xff] }
   0xe   :  { %303 = vmatprep.subr.bf16.mxu0 %v302_v21  ;;  %v33_v52 = vld [vmem:[%s493_s2 + $0x68] sm:$0xff]  ;;  %v318_v56 = vpack.c.bf16 %v51_v54, %v50_v53  ;;  %v35_v58 = vld [vmem:[%s493_s2 + $0x78] sm:$0xff]  ;;  %v14_v60 = vld [vmem:[%s494_s0] sm:$0xff] }
   0xf   :  { %329 = vmatpush3.bf16.msra.mxu1 %v326_v36  ;;  %v316_v55 = vpack.c.bf16 %v33_v52, %v32_v51  ;;  %v320_v59 = vpack.c.bf16 %v35_v58, %v34_v57  ;;  %v18_v61 = vld [vmem:[%s494_s0 + $0x20] sm:$0xff]  ;;  %v17_v62 = vld [vmem:[%s494_s0 + $0x18] sm:$0xff] }
  0x10   :  { %65 = vperm.xlu0 %331, %v57_v42  }
  0x11   :  { %305 = vmatpush3.bf16.msra.mxu0 %v304_v30 }
  0x12   :  { %307 = vmatprep.subr.bf16.mxu0 %v306_v33  ;;  %288 = vmatmul.mubr.msk.f32.vlgmr.msra.gmra.mrb[0].mxu1 %vm68_vm0, %v19_v48 }
  0x15   :  { %309 = vmatpush3.bf16.msra.mxu0 %v308_v41 }
  0x16   :  { %311 = vmatprep.subr.bf16.mxu0 %v310_v43 }
  0x19   :  { %313 = vmatpush3.bf16.msra.mxu0 %v312_v49 }
  0x1a   :  { %315 = vmatprep.subr.bf16.mxu0 %v314_v50 }
  0x1d   :  { %317 = vmatpush3.bf16.msra.mxu0 %v316_v55 }
  0x1e   :  { %319 = vmatprep.subr.bf16.mxu0 %v318_v56 }
  0x21   :  { %321 = vmatpush3.bf16.msra.mxu0 %v320_v59 }
  0x24   :  { %140 = vmatmul.mubr.f32.vlgmr.msra.gmra.mrb[0].mxu0 %v14_v60 }
  0x25   :  { %144 = vmatprep.mubr.f32.mxu0 %v18_v61 }
  0x28   :  { %145 = vmatmul.mubr.f32.gmra.mrb[2].mxu0 %v17_v62 }
  0x8b   :  { %v61_v2 = vpop.permute.xlu0 %60 }
  0x8f   :  { %v66_v10 = vpop.permute.xlu0 %65 }
  0xe5   :  { %v289_v63 = vpop.f32.mrb[0].mxu1 }
  0xe6   :  { %v216_v0 = vpop.f32.mrb[1].mxu1 }
  0xf7   :  { %v267_v1 = vpop.f32.mrb[0].mxu0 }
  0xf8   :  { %v268_v3 = vpop.f32.mrb[1].mxu0 }
  0xf9   :  { %v269_v4 = vadd.f32 %v268_v3, %v267_v1 }
  0xfb   :  { %v270_v5 = vpop.f32.mrb[2].mxu0  ;;  %v142_v6 = vadd.f32 %v269_v4, %v61_v2 }
  0xfc   :  { %v271_v7 = vpop.f32.mrb[3].mxu0 }
  0xfd   :  { %v272_v8 = vadd.f32 %v271_v7, %v270_v5  ;;  %v217_v9 = vadd.f32 %v216_v0, %v142_v6 }
  0xff   :  { %v147_v11 = vadd.f32 %v272_v8, %v66_v10  ;;  %v225_v12 = vmax.f32 %v217_v9, 0.0 }
 0x101   :  { %v222_v13 = vadd.f32 %v289_v63, %v147_v11  ;;  %227 = vst [vmem:[%s496_s3] sm:$0xff] %v225_v12 }
 0x103   :  { %v226_v14 = vmax.f32 %v222_v13, 0.0 }
 0x105   :  { %228 = vst [vmem:[%s496_s3 + $0x8] sm:$0xff] %v226_v14 }

</bundles_post_ra>
